<compile_context>
chip_gen: v7x
topology: tpu7x:2x2x1
jax: 0.10.0
libtpu: 0.0.40
codegen_flags: <defaults>
</compile_context>

<pallas_src>
import jax
import jax.numpy as jnp
from jax.experimental import pallas as pl
from jax.experimental.pallas import tpu as pltpu


def _round_up(x, m):
    return ((x + m - 1) // m) * m


def _pad_to(a, shape):
    """Zero-pad `a` up to `shape` (trailing padding on every axis)."""
    return jnp.pad(a, [(0, t - s) for s, t in zip(a.shape, shape)])


def _mlp_kernel(x1_ref, x2_ref, x3_ref,
                w1a_ref, w1b_ref, w1c_ref, b1_ref,
                w2_ref, b2_ref, o_ref):
    # Layer 1, concat fused, batch on lanes: three small MXU dots accumulated in f32.
    # Shapes: w1*_ref [H, d_i], x*_ref [d_i, TB] -> h [H, TB] (H = hidden padded to 8).
    h = jnp.dot(w1a_ref[...], x1_ref[...], preferred_element_type=jnp.float32)
    h = h + jnp.dot(w1b_ref[...], x2_ref[...], preferred_element_type=jnp.float32)
    h = h + jnp.dot(w1c_ref[...], x3_ref[...], preferred_element_type=jnp.float32)
    h = jnp.maximum(h + b1_ref[...], 0.0)                      # bias + ReLU on the VPU
    # Layer 2 (5 -> 1): sublane-weighted sum over the (padded) hidden axis on VPU/XLU.
    # Padded hidden rows have w2 == 0 so they contribute nothing. Output is lane-dense.
    y = jnp.sum(h * w2_ref[...], axis=0, keepdims=True) + b2_ref[...]
    o_ref[...] = y.astype(o_ref.dtype)


def explicit_model_forward(x1, x2, x3, params, *, block_cols=16384):
    """Pallas equivalent of ExplicitModel.forward (batch-on-lanes, concat fused).

    x1/x2/x3 are batch-major [B, d_i] (PyTorch layout); the wrapper relayouts them to
    feature-major [d_i, B] once. In a production pipeline, feed feature-major activations
    directly and skip that relayout.
    """
    w1, b1, w2, b2 = params                       # w1 [D,5], b1 [1,5], w2 [5,1], b2 [1,1]
    B = x1.shape[0]
    d1, d2, d3 = x1.shape[1], x2.shape[1], x3.shape[1]
    hidden = w1.shape[1]

    # Pad hidden / feature dims to sublane multiples of 8 (zero padding is exact).
    hp = _round_up(hidden, 8)
    d1p, d2p, d3p = (_round_up(d, 8) for d in (d1, d2, d3))

    # Weight prep: W1 split into per-input transposed slabs [hp, d_ip]; w2/b1 as columns.
    w1aT = _pad_to(w1[:d1].T, (hp, d1p))
    w1bT = _pad_to(w1[d1:d1 + d2].T, (hp, d2p))
    w1cT = _pad_to(w1[d1 + d2:].T, (hp, d3p))
    b1c = _pad_to(b1.reshape(hidden, 1), (hp, 1))
    w2c = _pad_to(w2.reshape(hidden, 1), (hp, 1))
    b2c = b2.reshape(1, 1)

    # Batch lives on the lane axis: tile must be a multiple of 128.
    tb = _round_up(min(block_cols, _round_up(B, 128)), 128)
    b_pad = _round_up(B, tb)
    grid = (b_pad // tb,)

    # Transpose + zero-pad activations (features -> sublanes, batch -> lanes).
    x1t = _pad_to(x1.T, (d1p, b_pad))
    x2t = _pad_to(x2.T, (d2p, b_pad))
    x3t = _pad_to(x3.T, (d3p, b_pad))

    def x_spec(d):
        return pl.BlockSpec((d, tb), lambda i: (0, i))          # stream over batch lanes

    def const_spec(shape):
        return pl.BlockSpec(shape, lambda i: (0, 0))            # VMEM-resident weights

    y = pl.pallas_call(
        _mlp_kernel,
        out_shape=jax.ShapeDtypeStruct((1, b_pad), jnp.float32),
        grid=grid,
        in_specs=[
            x_spec(d1p), x_spec(d2p), x_spec(d3p),
            const_spec((hp, d1p)), const_spec((hp, d2p)), const_spec((hp, d3p)),
            const_spec((hp, 1)),
            const_spec((hp, 1)),
            const_spec((1, 1)),
        ],
        out_specs=pl.BlockSpec((1, tb), lambda i: (0, i)),       # lane-dense output row
        compiler_params=pltpu.CompilerParams(
            dimension_semantics=("parallel",),                   # megacore sharding on v7x
        ),
    )(x1t, x2t, x3t, w1aT, w1bT, w1cT, b1c, w2c, b2c)

    return y[0, :B].reshape(B, 1)                               # back to [B, 1]


def init_params(key, input_dim1, input_dim2, input_dim3, hidden=5, out=1):
    """Deterministic init mirroring nn.Linear shapes (stored as [in, out])."""
    d = input_dim1 + input_dim2 + input_dim3
    k1, k2, k3, k4 = jax.random.split(key, 4)
    bound1 = 1.0 / jnp.sqrt(d)
    bound2 = 1.0 / jnp.sqrt(hidden)
    w1 = jax.random.uniform(k1, (d, hidden), jnp.float32, -bound1, bound1)
    b1 = jax.random.uniform(k2, (1, hidden), jnp.float32, -bound1, bound1)
    w2 = jax.random.uniform(k3, (hidden, out), jnp.float32, -bound2, bound2)
    b2 = jax.random.uniform(k4, (1, out), jnp.float32, -bound2, bound2)
    return (w1, b1, w2, b2)


def reference_forward(x1, x2, x3, params):
    w1, b1, w2, b2 = params
    x = jnp.concatenate([x1, x2, x3], axis=1)
    h = jnp.maximum(x @ w1 + b1, 0.0)
    return h @ w2 + b2


if __name__ == "__main__":
    input_dim1, input_dim2, input_dim3 = 4, 8, 16
    batch = 300   # deliberately not a multiple of the tile: exercises zero-pad + slice path

    key = jax.random.PRNGKey(0)
    kp, k1, k2, k3 = jax.random.split(key, 4)

    params = init_params(kp, input_dim1, input_dim2, input_dim3)
    x1 = jax.random.normal(k1, (batch, input_dim1), jnp.float32)
    x2 = jax.random.normal(k2, (batch, input_dim2), jnp.float32)
    x3 = jax.random.normal(k3, (batch, input_dim3), jnp.float32)

    # block_cols=128 keeps the demo tiny while exercising a 3-step pipelined grid
    # (300 -> padded to 384 lanes). Production default is 16384 lanes per tile.
    out = explicit_model_forward(x1, x2, x3, params, block_cols=128)
    out = jax.block_until_ready(out)

    ref = reference_forward(x1, x2, x3, params)
    assert out.shape == (batch, 1), out.shape
    assert jnp.allclose(out, ref, atol=1e-5, rtol=1e-5), "mismatch vs reference"

    print("KERNEL_OK")
</pallas_src>

<mosaic_0001>
module attributes {stable_mosaic.version = 11 : i64} {
  func.func @_mlp_kernel(%arg0: i32, %arg1: memref<8x128xf32, #tpu.memory_space<vmem>>, %arg2: memref<8x128xf32, #tpu.memory_space<vmem>>, %arg3: memref<16x128xf32, #tpu.memory_space<vmem>>, %arg4: memref<8x8xf32, #tpu.memory_space<vmem>>, %arg5: memref<8x8xf32, #tpu.memory_space<vmem>>, %arg6: memref<8x16xf32, #tpu.memory_space<vmem>>, %arg7: memref<8x1xf32, #tpu.memory_space<vmem>>, %arg8: memref<8x1xf32, #tpu.memory_space<vmem>>, %arg9: memref<1x1xf32, #tpu.memory_space<vmem>>, %arg10: memref<1x128xf32, #tpu.memory_space<vmem>>) attributes {dimension_semantics = [#tpu.dimension_semantics<parallel>], iteration_bounds = array<i64: 3>, scalar_prefetch = 0 : i64, scratch_operands = 0 : i64, tpu.core_type = #tpu.core_type<tc>, window_params = [{transform_indices = @transform_0, window_bounds = array<i64: 8, 128>}, {transform_indices = @transform_1, window_bounds = array<i64: 8, 128>}, {transform_indices = @transform_2, window_bounds = array<i64: 16, 128>}, {pipeline_mode = #tpu.pipeline_mode<synchronous>, transform_indices = @transform_3, window_bounds = array<i64: 8, 8>}, {pipeline_mode = #tpu.pipeline_mode<synchronous>, transform_indices = @transform_4, window_bounds = array<i64: 8, 8>}, {pipeline_mode = #tpu.pipeline_mode<synchronous>, transform_indices = @transform_5, window_bounds = array<i64: 8, 16>}, {pipeline_mode = #tpu.pipeline_mode<synchronous>, transform_indices = @transform_6, window_bounds = array<i64: 8, 1>}, {pipeline_mode = #tpu.pipeline_mode<synchronous>, transform_indices = @transform_7, window_bounds = array<i64: 8, 1>}, {pipeline_mode = #tpu.pipeline_mode<synchronous>, transform_indices = @transform_8, window_bounds = array<i64: 1, 1>}, {transform_indices = @transform_9, window_bounds = array<i64: 1, 128>}]} {
    %c0 = arith.constant 0 : index
    %c0_0 = arith.constant 0 : index
    %0 = vector.load %arg4[%c0, %c0_0] : memref<8x8xf32, #tpu.memory_space<vmem>>, vector<8x8xf32>
    %c0_1 = arith.constant 0 : index
    %c0_2 = arith.constant 0 : index
    %1 = vector.load %arg1[%c0_1, %c0_2] : memref<8x128xf32, #tpu.memory_space<vmem>>, vector<8x128xf32>
    %cst = arith.constant dense<0.000000e+00> : vector<8x128xf32>
    %2 = tpu.matmul %0, %1, %cst {dimension_numbers = #tpu.dot_dimension_numbers<[1], [0], [0], [1], [0, 0, 1, 1], [], []>} : vector<8x8xf32>, vector<8x128xf32>, vector<8x128xf32> -> vector<8x128xf32>
    %c0_3 = arith.constant 0 : index
    %c0_4 = arith.constant 0 : index
    %3 = vector.load %arg5[%c0_3, %c0_4] : memref<8x8xf32, #tpu.memory_space<vmem>>, vector<8x8xf32>
    %c0_5 = arith.constant 0 : index
    %c0_6 = arith.constant 0 : index
    %4 = vector.load %arg2[%c0_5, %c0_6] : memref<8x128xf32, #tpu.memory_space<vmem>>, vector<8x128xf32>
    %cst_7 = arith.constant dense<0.000000e+00> : vector<8x128xf32>
    %5 = tpu.matmul %3, %4, %cst_7 {dimension_numbers = #tpu.dot_dimension_numbers<[1], [0], [0], [1], [0, 0, 1, 1], [], []>} : vector<8x8xf32>, vector<8x128xf32>, vector<8x128xf32> -> vector<8x128xf32>
    %6 = arith.addf %2, %5 : vector<8x128xf32>
    %c0_8 = arith.constant 0 : index
    %c0_9 = arith.constant 0 : index
    %7 = vector.load %arg6[%c0_8, %c0_9] : memref<8x16xf32, #tpu.memory_space<vmem>>, vector<8x16xf32>
    %c0_10 = arith.constant 0 : index
    %c0_11 = arith.constant 0 : index
    %8 = vector.load %arg3[%c0_10, %c0_11] : memref<16x128xf32, #tpu.memory_space<vmem>>, vector<16x128xf32>
    %cst_12 = arith.constant dense<0.000000e+00> : vector<8x128xf32>
    %9 = tpu.matmul %7, %8, %cst_12 {dimension_numbers = #tpu.dot_dimension_numbers<[1], [0], [0], [1], [0, 0, 1, 1], [], []>} : vector<8x16xf32>, vector<16x128xf32>, vector<8x128xf32> -> vector<8x128xf32>
    %10 = arith.addf %6, %9 : vector<8x128xf32>
    %c0_13 = arith.constant 0 : index
    %c0_14 = arith.constant 0 : index
    %11 = vector.load %arg7[%c0_13, %c0_14] : memref<8x1xf32, #tpu.memory_space<vmem>>, vector<8x1xf32>
    %12 = vector.broadcast %11 : vector<8x1xf32> to vector<8x128xf32>
    %13 = arith.addf %10, %12 : vector<8x128xf32>
    %cst_15 = arith.constant 0.000000e+00 : f32
    %14 = vector.broadcast %cst_15 : f32 to vector<8x128xf32>
    %15 = arith.maximumf %13, %14 : vector<8x128xf32>
    %c0_16 = arith.constant 0 : index
    %c0_17 = arith.constant 0 : index
    %16 = vector.load %arg8[%c0_16, %c0_17] : memref<8x1xf32, #tpu.memory_space<vmem>>, vector<8x1xf32>
    %17 = vector.broadcast %16 : vector<8x1xf32> to vector<8x128xf32>
    %18 = arith.mulf %15, %17 : vector<8x128xf32>
    %cst_18 = arith.constant dense<0.000000e+00> : vector<128xf32>
    %19 = vector.multi_reduction <add>, %18, %cst_18 [0] : vector<8x128xf32> to vector<128xf32>
    %20 = vector.shape_cast %19 : vector<128xf32> to vector<1x128xf32>
    %c0_19 = arith.constant 0 : index
    %c0_20 = arith.constant 0 : index
    %21 = vector.load %arg9[%c0_19, %c0_20] : memref<1x1xf32, #tpu.memory_space<vmem>>, vector<1x1xf32>
    %22 = vector.broadcast %21 : vector<1x1xf32> to vector<1x128xf32>
    %23 = arith.addf %20, %22 : vector<1x128xf32>
    %c0_21 = arith.constant 0 : index
    %c0_22 = arith.constant 0 : index
    %24 = vector.load %arg10[%c0_21, %c0_22] : memref<1x128xf32, #tpu.memory_space<vmem>>, vector<1x128xf32>
    tpu.vector_store %arg10[%c0_21, %c0_22], %23 {strides = array<i32>} : memref<1x128xf32, #tpu.memory_space<vmem>>, vector<1x128xf32>,
    return
  }
  func.func @transform_0(%arg0: i32) -> (i32, i32) {
    %c0_i32 = arith.constant 0 : i32
    %c0_i32_0 = arith.constant 0 : i32
    return %c0_i32, %arg0 : i32, i32
  }
  func.func @transform_1(%arg0: i32) -> (i32, i32) {
    %c0_i32 = arith.constant 0 : i32
    %c0_i32_0 = arith.constant 0 : i32
    return %c0_i32, %arg0 : i32, i32
  }
  func.func @transform_2(%arg0: i32) -> (i32, i32) {
    %c0_i32 = arith.constant 0 : i32
    %c0_i32_0 = arith.constant 0 : i32
    return %c0_i32, %arg0 : i32, i32
  }
  func.func @transform_3(%arg0: i32) -> (i32, i32) {
    %c0_i32 = arith.constant 0 : i32
    %c0_i32_0 = arith.constant 0 : i32
    %c0_i32_1 = arith.constant 0 : i32
    return %c0_i32, %c0_i32_0 : i32, i32
  }
  func.func @transform_4(%arg0: i32) -> (i32, i32) {
    %c0_i32 = arith.constant 0 : i32
    %c0_i32_0 = arith.constant 0 : i32
    %c0_i32_1 = arith.constant 0 : i32
    return %c0_i32, %c0_i32_0 : i32, i32
  }
  func.func @transform_5(%arg0: i32) -> (i32, i32) {
    %c0_i32 = arith.constant 0 : i32
    %c0_i32_0 = arith.constant 0 : i32
    %c0_i32_1 = arith.constant 0 : i32
    return %c0_i32, %c0_i32_0 : i32, i32
  }
  func.func @transform_6(%arg0: i32) -> (i32, i32) {
    %c0_i32 = arith.constant 0 : i32
    %c0_i32_0 = arith.constant 0 : i32
    %c0_i32_1 = arith.constant 0 : i32
    return %c0_i32, %c0_i32_0 : i32, i32
  }
  func.func @transform_7(%arg0: i32) -> (i32, i32) {
    %c0_i32 = arith.constant 0 : i32
    %c0_i32_0 = arith.constant 0 : i32
    %c0_i32_1 = arith.constant 0 : i32
    return %c0_i32, %c0_i32_0 : i32, i32
  }
  func.func @transform_8(%arg0: i32) -> (i32, i32) {
    %c0_i32 = arith.constant 0 : i32
    %c0_i32_0 = arith.constant 0 : i32
    %c0_i32_1 = arith.constant 0 : i32
    return %c0_i32, %c0_i32_0 : i32, i32
  }
  func.func @transform_9(%arg0: i32) -> (i32, i32) {
    %c0_i32 = arith.constant 0 : i32
    %c0_i32_0 = arith.constant 0 : i32
    return %c0_i32, %arg0 : i32, i32
  }
}

</mosaic_0001>

<bundles_post_ra>
// kernel: tpu_custom_call.1
= control target key start
LH: loop header
LB: loop body
LE: loop exit
PB: predicated region body
PF: predicated region fallthrough
CT: control target
= control target key end

     0   :  { %s1417_s0 = inlined_call_operand.hbm [shape: f32[8,384], index: 0, kind: input, shape index: {}]   ;;  %s1418_s1 = inlined_call_operand.vmem [shape: f32[8,384], index: 1, kind: input, shape index: {}]   ;;  %s1419_s2 = inlined_call_operand.hbm [shape: f32[16,384], index: 2, kind: input, shape index: {}]   ;;  %s1420_s3 = inlined_call_operand.vmem [shape: f32[8,8], index: 3, kind: input, shape index: {}]   ;;  %s1421_s4 = inlined_call_operand.hbm [shape: f32[8,8], index: 4, kind: input, shape index: {}]   ;;  %s1422_s5 = inlined_call_operand.vmem [shape: f32[8,16], index: 5, kind: input, shape index: {}]   ;;  %s1423_s6 = inlined_call_operand.vmem [shape: f32[8,1], index: 6, kind: input, shape index: {}]   ;;  %s1424_s7 = inlined_call_operand.vmem [shape: f32[8,1], index: 7, kind: input, shape index: {}]   ;;  %s1425_s8 = inlined_call_operand.<no memory space> [shape: f32[1,1], index: 8, kind: input, shape index: {}]   ;;  %s1426_s9 = inlined_call_operand.hbm [shape: f32[1,384], index: 9, kind: output, shape index: {}]  }
   0x1   :  { %1435 = sst [smem:[#allocation18_spill]] %s1421_s4  ;;  %v14_v0 = vstv %s1425_s8 }
   0x2   :  { %15 = vst [vmem:[#allocation2] sm:$0x1] %v14_v0 }
   0x3   :  { %16 = vsyncpa [#allocation4], 0 }
   0x4   :  { %18 = vsyncpa [#allocation4 + $0x1], 0 }
   0x5   :  { %19 = vsyncpa [#allocation7], 0 }
   0x6   :  { %21 = vsyncpa [#allocation7 + $0x1], 0 }
   0x7   :  { %22 = vsyncpa [#allocation5], 0 }
   0x8   :  { %24 = vsyncpa [#allocation5 + $0x1], 0  ;;  %s1147_s11 = smov 0   ;;  %s1149_s12 = smov 0  }
   0x9   :  { %s1151_s13 = smov 0   ;;  %s1153_s14 = smov 0  }
   0xa LB: > { %1436 = sst [smem:[#allocation14_spill]] %s1077_s13  ;;  %s1168_s8 = sadd.s32 4294967295, %s1081_s14   ;;  %s1081_s14 = sphi %s1153_s14, %s1457_s14   ;;  %s1077_s13 = sphi %s1151_s13, %s1459_s13   ;;  %s1073_s12 = sphi %s1149_s12, %s1461_s12   ;;  %s1069_s11 = sphi %s1147_s11, %s1460_s11  }
   0xb   : > { %s802_s15 = sadd.s32 4294967294, %s1081_s14   ;;  %s1172_s16 = sadd.s32 1, %s1081_s14  }
   0xc   : > { %1437 = sst [smem:[#allocation15_spill]] %s1172_s16  ;;  %s37_s17 = sadd.s32 1, %s1077_s13 }
   0xd   : > { %s34_s18 = ssub.s32 %s1081_s14, %s1172_s16  ;;  %p44_p0 = scmp.ne.s32.totalorder %s1077_s13, %s1073_s12 }
   0xe   : > { %p35_p1 = scmp.eq.s32.totalorder %s34_s18, 0  ;;  %p50_p2 = scmp.ne.s32.totalorder %s1073_s12, %s1069_s11 }
   0xf   : > { %p1428_p3 = scmp.eq.s32.totalorder %s1168_s8, 0  ;;  %p252_p4 = scmp.eq.s32.totalorder %s1168_s8, 2 }
  0x10   : > { %s1184_s19 = scalar_select %p35_p1, %s1077_s13, %s37_s17  }
  0x11   : > { %p1188_p5 = por %p1428_p3, %p50_p2  ;;  %p1195_p6 = por %p252_p4, %p44_p0 }
  0x12   : > { %1438 = sst [smem:[#allocation16_spill]] %s1184_s19  ;;  %p258_p7 = scmp.eq.s32.totalorder %s802_s15, 2 }
  0x13   : > { %s1439_s20 = scalar_select %p1188_p5, 1, 0 }
  0x14   : > { %s1440_s21 = scalar_select %p1195_p6, 1, 0 }
  0x15   : > { %p803_p8 = scmp.ge.s32.totalorder %s1081_s14, 1  ;;  %p265_p9 = scmp.lt.s32.totalorder %s1081_s14, 4 }
  0x16   : > { %p1201_p10 = por %p258_p7, %p50_p2  ;;  %s1083_s24 = smov [#allocation8]  }
  0x17   : > { %p1205_p11 = pnand %p803_p8, %p265_p9  ;;  %s281_s25 = sshll.u32 %s1083_s24, 4  ;;  %s282_s25 = int_to_ptr.vmem [resolvable:$true] %s281_s25 }
  0x18   : > { %s1441_s22 = scalar_select %p1201_p10, 1, 0 }
  0x19   : > { %s1443_s23 = scalar_select %p1205_p11, 1, 0 }
  0x1a   : > { %1442 = sst [smem:[#allocation17_spill]] %s1441_s22  ;;  %p858_p12 = pneg %p1205_p11 }
  0x1b   : > { %p45_p13 = scmp.eq.s32.totalorder %s1081_s14, 0  ;;  %s1214_s26 = sand.u32 1, %s1077_s13  }
  0x1c   : > { %p1218_p2 = pnand %p858_p12, %p1428_p3  ;;  %s806_s29 = sshll.u32 %s1214_s26, 3 }
  0x1d   : > { %p1225_p4 = por %p45_p13, %p44_p0  ;;  %s1446_s4 = sld [smem:[#allocation18_spill]] }
  0x1e   : > { %p921_p8 = pneg %p1218_p2 }
  0x1f   : > { %s1445_s28 = scalar_select %p1225_p4, 1, 0 }
  0x23   : > { %s919_s15 = scalar_lea.hbm %s1446_s4, 128 }
  0x24   : > { %p920_p7 = scmp.ne.s32.totalorder %s1446_s4, %s919_s15  ;;  %p926_p0 = scmp.lt.u32.totalorder %s919_s15, %s1446_s4 }
  0x26   : > { %p922_p9 = pnand %p921_p8, %p920_p7 }
  0x28   : > { %p923_p12 = pneg %p922_p9 }
  0x2a   : > { %p928_p13 = pnand %p926_p0, %p923_p12 }
  0x2c   : > { %931 = shalt.err (!%p928_p13)
}
  0x2d   : > { %s932_s13 = scalar_lea.vmem %s282_s25, 128  ;;  %p940_p6 = scmp.lt.s32.totalorder %s282_s25, %s282_s25 }
  0x2e   : > { %p933_p3 = scmp.ne.s32.totalorder %s282_s25, %s932_s13  ;;  %p941_p5 = scmp.lt.s32.totalorder %s932_s13, %s932_s13 }
  0x30   : > { %p935_p1 = pnand %p933_p3, %p921_p8  ;;  %p942_p11 = por %p941_p5, %p940_p6 }
  0x32   : > { %p936_p10 = pneg %p935_p1 }
  0x34   : > { %p943_p4 = pnand %p942_p11, %p936_p10 }
  0x36   : > { %946 = shalt.err (!%p943_p4)
}
  0x37   : > { %861 = dma.hbm_to_vmem [thread:$0]  (!%p1218_p2), %s1446_s4, 128, %s282_s25, [#allocation7]  }
  0x38   : > { %s807_s19 = sshll.u32 %s1081_s14, 7  ;;  %s308_s15 = scalar_lea.vmem [#allocation3], %s806_s29 }
  0x39   : > { %s315_s17 = sshll.u32 %s308_s15, 4  ;;  %s1250_s13 = scalar_lea.hbm %s1417_s0, %s807_s19  ;;  %s1252_s17 = int_to_ptr.vmem [resolvable:$true] %s315_s17 }
  0x3a   : > { %p1447_p3 = scmp.ne.s32.totalorder %s1445_s28, 0  ;;  %p1448_p5 = scmp.lt.s32.totalorder %s1081_s14, 3 }
  0x3b   : > { %s808_s25 = sshll.u32 %s1214_s26, 4  ;;  %s1266_s10 = scalar_lea.hbm %s1419_s2, %s807_s19 }
  0x3c   : > { %p1258_p6 = pnand %p1448_p5, %p1447_p3  ;;  %s1268_s15 = scalar_lea.vmem [#allocation6], %s808_s25 }
  0x3d   : > { %s339_s18 = sshll.u32 %s1268_s15, 4  ;;  %s305_s24 = scalar_lea.sflag [#allocation4], %s1214_s26  ;;  %s1299_s18 = int_to_ptr.vmem [resolvable:$true] %s339_s18 }
  0x3e   : > { %s947_s28 = scalar_lea.hbm %s1250_s13, 128  ;;  %p949_p11 = pneg %p1258_p6 }
  0x3f   : > { %p948_p10 = scmp.ne.s32.totalorder %s1250_s13, %s947_s28  ;;  %s952_s22 = scalar_lea.hbm %s1417_s0, 384 }
  0x40   : > { %p953_p4 = scmp.lt.u32.totalorder %s1250_s13, %s1417_s0  ;;  %p954_p7 = scmp.lt.u32.totalorder %s952_s22, %s947_s28 }
  0x41   : > { %p950_p1 = pnand %p949_p11, %p948_p10  ;;  %p956_p9 = scmp.lt.u32.totalorder %s947_s28, %s1250_s13 }
  0x42   : > { %p955_p8 = por %p954_p7, %p953_p4 }
  0x43   : > { %p951_p2 = pneg %p950_p1 }
  0x44   : > { %p957_p12 = por %p956_p9, %p955_p8 }
  0x46   : > { %p958_p0 = pnand %p957_p12, %p951_p2 }
  0x48   : > { %961 = shalt.err (!%p958_p0)
}
  0x49   : > { %s962_s26 = scalar_lea.vmem %s1252_s17, 128  ;;  %s1084_s4 = smov [#allocation3]  }
  0x4a   : > { %p963_p13 = scmp.ne.s32.totalorder %s1252_s17, %s962_s26  ;;  %s967_s16 = sshll.u32 %s1084_s4, 4  ;;  %s968_s16 = int_to_ptr.vmem [resolvable:$false] %s967_s16 }
  0x4b   : > { %s969_s25 = scalar_lea.vmem %s968_s16, 256  ;;  %p970_p10 = scmp.lt.s32.totalorder %s1252_s17, %s968_s16 }
  0x4c   : > { %p965_p3 = pnand %p963_p13, %p949_p11  ;;  %p971_p1 = scmp.lt.s32.totalorder %s969_s25, %s962_s26 }
  0x4e   : > { %p966_p5 = pneg %p965_p3  ;;  %p972_p4 = por %p971_p1, %p970_p10 }
  0x50   : > { %p973_p7 = pnand %p972_p4, %p966_p5 }
  0x52   : > { %976 = shalt.err (!%p973_p7)
}
  0x53   : > { %865 = dma.hbm_to_vmem [thread:$0]  (!%p1258_p6), %s1250_s13, 128, %s1252_s17, %s305_s24  }
  0x54   : > { %s329_s22 = sand.u32 1, %s1081_s14   ;;  %s977_s28 = scalar_lea.hbm %s1266_s10, 256 }
  0x55   : > { %s1302_s30 = scalar_lea.sflag [#allocation7], %s329_s22  ;;  %p978_p2 = scmp.ne.s32.totalorder %s1266_s10, %s977_s28 }
  0x56   : > { %s982_s26 = scalar_lea.hbm %s1419_s2, 768  ;;  %p983_p12 = scmp.lt.u32.totalorder %s1266_s10, %s1419_s2 }
  0x57   : > { %p980_p8 = pnand %p978_p2, %p949_p11  ;;  %p984_p0 = scmp.lt.u32.totalorder %s982_s26, %s977_s28 }
  0x58   : > { %p986_p3 = scmp.lt.u32.totalorder %s977_s28, %s1266_s10 }
  0x59   : > { %p981_p9 = pneg %p980_p8  ;;  %p985_p13 = por %p984_p0, %p983_p12 }
  0x5b   : > { %p987_p5 = por %p986_p3, %p985_p13 }
  0x5d   : > { %p988_p10 = pnand %p987_p5, %p981_p9 }
  0x5f   : > { %991 = shalt.err (!%p988_p10)
}
  0x60   : > { %s992_s17 = scalar_lea.vmem %s1299_s18, 256  ;;  %s1085_s13 = smov [#allocation6]  }
  0x61   : > { %p993_p1 = scmp.ne.s32.totalorder %s1299_s18, %s992_s17  ;;  %s997_s15 = sshll.u32 %s1085_s13, 4  ;;  %s998_s15 = int_to_ptr.vmem [resolvable:$false] %s997_s15 }
  0x62   : > { %s999_s24 = scalar_lea.vmem %s998_s15, 512  ;;  %p1000_p2 = scmp.lt.s32.totalorder %s1299_s18, %s998_s15 }
  0x63   : > { %p995_p4 = pnand %p993_p1, %p949_p11  ;;  %p1001_p8 = scmp.lt.s32.totalorder %s999_s24, %s992_s17 }
  0x65   : > { %p996_p7 = pneg %p995_p4  ;;  %p1002_p12 = por %p1001_p8, %p1000_p2 }
  0x67   : > { %p1003_p0 = pnand %p1002_p12, %p996_p7 }
  0x69   : > { %1006 = shalt.err (!%p1003_p0)
}
  0x6a   : > { %s1086_s25 = smov 384   ;;  %s1087_s22 = smov 128  }
  0x6b   : > { %s1088_s28 = smov 8   ;;  %p1450_p11 = scmp.ne.s32.totalorder %s1443_s23, 0 }
  0x6c   : > { %868 = dma.hbm_to_vmem [thread:$0]  (!%p1258_p6), %s1266_s10, 256, %s1299_s18, %s1302_s30, %s1086_s25, %s1087_s22, %s1088_s28  }
  0x6d   : > { %351 = sbr.rel (%p1450_p11) target bundleno = 383 (0x17f), region = 56  ;;  %s1331_s29 = sand.u32 (!%p1450_p11), 1, %s1073_s12  }
  0x6e   : > { %s811_s19 = sshll.u32 (!%p1450_p11), %s1331_s29, 3  ;;  %s354_s26 = scalar_lea.sflag (!%p1450_p11), [#allocation4], %s1331_s29 }
  0x6f   : > { %s357_s4 = scalar_lea.vmem (!%p1450_p11), [#allocation3], %s811_s19  ;;  %p1451_p9 = scmp.ne.s32.totalorder (!%p1450_p11), %s1439_s20, 0 }
  0x74   : > { %1052 = dma.done.wait (%p1451_p9), %s354_s26, 128  }
  0x75   : > { %1054 = vsyncadd (%p1451_p9), %s354_s26, 4294967168  ;;  %s362_s27 = sand.u32 1, %s1168_s8   ;;  %s812_s23 = sshll.u32 %s1331_s29, 4 }
  0x76   : > { %s363_s10 = scalar_lea.sflag [#allocation7], %s362_s27  ;;  %s366_s18 = scalar_lea.vmem [#allocation6], %s812_s23 }
  0x77   : > { %1056 = dma.done.wait (%p1451_p9), %s363_s10, 256  }
  0x78   : > { %1058 = vsyncadd (%p1451_p9), %s363_s10, 4294967040  ;;  %p1452_p6 = scmp.eq.s32.totalorder %s1168_s8, 0 }
  0x7a   : > { %1060 = dma.done.wait (%p1452_p6), [#allocation7], 128   ;;  %p1453_p13 = pmov %p1452_p6 }
  0x7b   : > { %p413_p3 = scmp.lt.s32.totalorder %s1168_s8, 2  ;;  %v1089_v1 = vmov 0.0   ;;  %vm1090_vm0 = vmmov 0   ;;  %v1091_v2 = vmov 0   ;;  %vm421_vm1 = vcmask 64512   ;;  %v419_v4 = vld [vmem:[#allocation8] sm:$0xff] }
  0x7c   : > { %1062 = vsyncadd (%p1453_p13), [#allocation7], 4294967168  ;;  %828 = vmatprep.subr.mxu0 %v1089_v1  ;;  %830 = vmatprep.mubr.msk.f32.mxu0 %vm1090_vm0, %v1089_v1  ;;  %v418_v5 = vld [vmem:[%s357_s4] sm:$0xff]  ;;  %v569_v7 = vld [vmem:[%s366_s18] sm:$0xff]  ;;  %v1092_v9 = vmov 0.0|0.0   ;;  %vm571_vm2 = vcmask 130048   ;;  %v673_v26 = vlaneseq }
  0x7d   : > { %s414_s30 = scalar_select %p413_p3, %s1168_s8, 2  ;;  %833 = vmatprep.subr.mxu1 %v1089_v1  ;;  %835 = vmatprep.mubr.msk.f32.mxu1 %vm1090_vm0, %v1089_v1  ;;  %v417_v6 = vld [vmem:[%s1420_s3] sm:$0xff] }
  0x7e   : > { %917 = vset.pattern.permute.xlu0 %v1091_v2  ;;  %918 = vset.pattern.permute.xlu1 %v1091_v2  ;;  %v570_v8 = vld [vmem:[%s366_s18 + $0x8] sm:$0xff]  ;;  %v674_v30 = vshrl.u32 %v673_v26, 7  ;;  %s818_s27 = sshll.u32 %s1168_s8, 4  ;;  %s412_s23 = scalar_lea.vmem [#allocation9], %s1331_s29 }
  0x7f   : > { %s814_s20 = sshll.u32 %s414_s30, 3  ;;  %834 = vmatpush3.msra.mxu1 %v418_v5  ;;  %v846_v10 = vpack.c.bf16 %v570_v8, %v569_v7  ;;  %v646_v11 = vld [vmem:[%s1423_s6] sm:$0xff]  ;;  %s692_s10 = sshll.u32 %s412_s23, 4  ;;  %s1376_s10 = int_to_ptr.vmem [resolvable:$true] %s692_s10 }
  0x80   : > { %s416_s13 = scalar_lea.vmem %s1418_s1, %s814_s20  ;;  %836 = vmatmul.mubr.msk.f32.vlgmr.msra.gmra.mrb[0].mxu1 %vm421_vm1, %v417_v6  ;;  %v667_v12 = vld [vmem:[#allocation2] sm:$0x1]  ;;  %649 = vperm.xlu0 %917, %v646_v11   ;;  %v675_v33 = vsub.s32 0, %v674_v30  ;;  %s1374_s20 = scalar_lea.hbm %s1426_s9, %s818_s27 }
  0x81   : > { %v420_v3 = vld [vmem:[%s416_s13] sm:$0xff]  ;;  %670 = vperm.xlu1 %918, %v667_v12   ;;  %s680_s16 = scalar_lea.sflag [#allocation5], %s1331_s29  ;;  %s1007_s17 = scalar_lea.vmem %s1376_s10, 16 }
  0x82   : > { %829 = vmatpush3.msra.mxu0 %v420_v3  ;;  %v568_v13 = vld [vmem:[%s1422_s5] sm:$0xff]  ;;  %p1008_p5 = scmp.ne.s32.totalorder %s1376_s10, %s1007_s17  ;;  %p1454_p10 = scmp.ne.s32.totalorder %s1440_s21, 0 }
  0x83   : > { %831 = vmatmul.mubr.msk.f32.vlgmr.msra.gmra.mrb[0].mxu0 %vm421_vm1, %v419_v4  ;;  %845 = vmatprep.subr.bf16.mxu0 %v1092_v9  ;;  %v654_v14 = vld [vmem:[%s1424_s7] sm:$0xff]  ;;  %s1093_s8 = smov [#allocation9]  }
  0x84   : > { %842 = vmatprep.mubr.msk.f32.mxu0 %vm1090_vm0, %v1089_v1  ;;  %847 = vmatpush3.bf16.msra.mxu0 %v846_v10  ;;  %p1009_p1 = pnand %p1008_p5, %p1454_p10  ;;  %s1011_s13 = sshll.u32 %s1093_s8, 4  ;;  %s1012_s13 = int_to_ptr.vmem [resolvable:$false] %s1011_s13 }
  0x85   : > { %657 = vperm.xlu0 %917, %v654_v14   ;;  %s1013_s15 = scalar_lea.vmem %s1012_s13, 32  ;;  %p1014_p7 = scmp.lt.s32.totalorder %s1376_s10, %s1012_s13 }
  0x86   : > { %p1010_p4 = pneg %p1009_p1  ;;  %p1015_p2 = scmp.lt.s32.totalorder %s1013_s15, %s1007_s17 }
  0x87   : > { %843 = vmatmul.mubr.msk.f32.vlgmr.msra.gmra.mrb[2].mxu0 %vm571_vm2, %v568_v13 }
  0x88   : > { %p1016_p8 = por %p1015_p2, %p1014_p7 }
  0x8a   : > { %p1017_p12 = pnand %p1016_p8, %p1010_p4 }
  0xff   : > { %v650_v20 = vpop.permute.xlu0 %649 }
 0x100   : > { %v671_v34 = vpop.permute.xlu1 %670 }
 0x101   : > { %v676_v37 = vrot.slane %v671_v34, %v675_v33 }
 0x104   : > { %v658_v27 = vpop.permute.xlu0 %657 }
 0x153   : > { %v564_v17 = vpop.f32.mrb[0].mxu1 }
 0x154   : > { %v837_v19 = vpop.f32.mrb[1].mxu1 }
 0x156   : > { %v491_v15 = vpop.f32.mrb[0].mxu0 }
 0x157   : > { %v832_v16 = vpop.f32.mrb[1].mxu0  ;;  %v565_v18 = vadd.f32 %v564_v17, %v491_v15 }
 0x15a   : > { %v641_v21 = vpop.f32.mrb[2].mxu0 }
 0x15b   : > { %v645_v22 = vadd.f32 %v641_v21, %v565_v18  ;;  %v844_v23 = vpop.f32.mrb[3].mxu0 }
 0x15d   : > { %v652_v24 = vadd.f32 %v650_v20, %v645_v22 }
 0x15f   : > { %v653_v25 = vmax.f32 %v652_v24, 0.0 }
 0x161   : > { %v660_v28 = vmul.f32 %v658_v27, %v653_v25 }
 0x163   : > { %v661_v29 = vrot.slane %v660_v28, 4 }
 0x165   : > { %v662_v31 = vadd.f32 %v661_v29, %v660_v28 }
 0x167   : > { %v663_v32 = vrot.slane %v662_v31, 2 }
 0x169   : > { %v664_v35 = vadd.f32 %v663_v32, %v662_v31 }
 0x16b   : > { %v665_v36 = vrot.slane %v664_v35, 1 }
 0x16d   : > { %v666_v38 = vadd.f32 %v665_v36, %v664_v35 }
 0x16f   : > { %v677_v39 = vadd.f32 %v676_v37, %v666_v38 }
 0x171   : > { %678 = vst [vmem:[%s412_s23] sm:$0x1] %v677_v39 }
 0x172   : > { %1020 = shalt.err (!%p1017_p12)
}
 0x173   : > { %s1021_s29 = scalar_lea.hbm %s1374_s20, 16  ;;  %s1025_s22 = scalar_lea.hbm %s1426_s9, 48 }
 0x174   : > { %p1022_p0 = scmp.ne.s32.totalorder %s1374_s20, %s1021_s29  ;;  %p1026_p6 = scmp.lt.u32.totalorder %s1374_s20, %s1426_s9 }
 0x175   : > { %p1027_p13 = scmp.lt.u32.totalorder %s1025_s22, %s1021_s29  ;;  %p1029_p5 = scmp.lt.u32.totalorder %s1021_s29, %s1374_s20 }
 0x176   : > { %p1023_p11 = pnand %p1022_p0, %p1454_p10 }
 0x177   : > { %p1028_p3 = por %p1027_p13, %p1026_p6 }
 0x178   : > { %p1024_p9 = pneg %p1023_p11 }
 0x179   : > { %p1030_p1 = por %p1029_p5, %p1028_p3 }
 0x17b   : > { %p1031_p4 = pnand %p1030_p1, %p1024_p9 }
 0x17d   : > { %1034 = shalt.err (!%p1031_p4)
}
 0x17e   : > { %856 = dma.vmem_to_hbm [thread:$0]  (%p1454_p10), %s1376_s10, 16, %s1374_s20, %s680_s16  }
 0x17f PF: > { %s1455_s26 = sld [smem:[#allocation17_spill]]  ;;  %p876_p7 = scmp.ge.s32.totalorder %s1081_s14, 2 }
 0x180   : > { %s704_s4 = sand.u32 1, %s1069_s11  }
 0x181   : > { %s705_s27 = scalar_lea.sflag [#allocation5], %s704_s4 }
 0x185   : > { %p1456_p2 = scmp.ne.s32.totalorder %s1455_s26, 0 }
 0x187   : > { %p870_p8 = pnand %p876_p7, %p1456_p2 }
 0x189   : > { %1064 = dma.done.wait (!%p870_p8), %s705_s27, 16  }
 0x18a   : > { %1066 = vsyncadd (!%p870_p8), %s705_s27, 4294967280  ;;  %s1457_s14 = sld [smem:[#allocation15_spill]]  ;;  %s1458_s23 = sld [smem:[#allocation14_spill]] }
 0x18b   : > { %s1459_s13 = sld [smem:[#allocation16_spill]]  ;;  %s1460_s11 = smov %s1073_s12 }
 0x190   : > { %p27_p12 = scmp.ge.s32.totalorder %s1457_s14, 5   ;;  %s1461_s12 = smov %s1458_s23 }
 0x192   :  { %29 = sbr.rel (!%p27_p12) target bundleno = 10 (0xa), region = 121 }
 0x199   :  { %709 = vsyncpa [#allocation4], 1 }
 0x19a   :  { %711 = vsyncpa [#allocation4 + $0x1], 1 }
 0x19b   :  { %712 = vsyncpa [#allocation7], 1 }
 0x19c   :  { %714 = vsyncpa [#allocation7 + $0x1], 1 }
 0x19d   :  { %715 = vsyncpa [#allocation5], 1 }
 0x19e   :  { %717 = vsyncpa [#allocation5 + $0x1], 1 }

</bundles_post_ra>
